<compile_context>
chip_gen: v6e
topology: v6e:2x2x1
jax: 0.10.0
libtpu: 0.0.40
codegen_flags: <defaults>
</compile_context>

<pallas_src>
import math
from functools import partial

import jax
import jax.numpy as jnp
from jax import lax
from jax.experimental import pallas as pl
from jax.experimental.pallas import tpu as pltpu

# ---- social-force hyperparameters (socialforce defaults) ----
V0 = 2.1            # PedPedPotential v0  [m^2/s^2]
SIGMA = 0.3         # PedPedPotential sigma [m]
POT_DELTA_T = 0.4   # delta_t used inside the ped-ped potential's b()
FD_DELTA = 1e-3     # finite-difference step for grad_r_ab (parity path)
TWOPHI = 200.0      # FieldOfView angle (degrees)
COSPHI = math.cos(TWOPHI / 2.0 / 180.0 * math.pi)
OUT_OF_VIEW = 0.5   # FieldOfView out_of_view_factor
TAU = 0.5
DELTA_T = 0.4
OVERSAMPLING = 10
MAX_SPEED_MULT = 1.3   # Simulator.max_speed_multiplier

_HIGH = jax.lax.Precision.HIGHEST   # keep MXU-offloaded reductions/transposes f32-exact


def _default_vmem_limit():
    """Scoped-VMEM ceiling with headroom, sized per detected TPU generation."""
    try:
        cap = pltpu.get_tpu_info().vmem_capacity_bytes
        return int(min(cap * 3 // 4, 100 * 1024 * 1024))
    except Exception:
        return None   # fall back to the compiler default


_VMEM_LIMIT_BYTES = _default_vmem_limit()


# ---------------------------------------------------------------------------
# Fused Pallas kernel: all OVERSAMPLING steps of Simulator.forward
# State is lane-dense: (10, n) with agents on the lane axis.
# Pairwise matrices are (n, n) with beta on sublanes (axis 0) and alpha on lanes (axis 1).
# ---------------------------------------------------------------------------
def _sim_kernel(state_ref, out_ref, *, oversampling, dt, use_analytic_grad):
    s = state_ref[...]                                   # (10, n) f32, VMEM resident
    n = s.shape[1]

    # ---- loop-invariant quantities (hoisted out of the oversampling loop) ----
    row_id = lax.broadcasted_iota(jnp.int32, (n, n), 0)
    col_id = lax.broadcasted_iota(jnp.int32, (n, n), 1)
    eye_b = row_id == col_id                             # (n, n) bool self-mask
    eyef = jnp.where(eye_b, 1.0, 0.0).astype(jnp.float32)  # identity, MXU transposer operand
    ones_row = jnp.ones((1, n), jnp.float32)             # MXU reduction operand
    pad3 = jnp.zeros((3, n), jnp.float32)                # pads packed slab to 8 sublanes

    dest_x, dest_y = s[6:7, :], s[7:8, :]                # (1, n) constants
    tau_inv = 1.0 / s[8:9, :]
    pref = s[9:10, :]
    max_sp = pref * MAX_SPEED_MULT

    coef_c = 0.5 * V0 / SIGMA                            # folded constant
    exp_k = -0.5 / SIGMA

    def rows_to_cols(rows8):
        """(8, n) rows -> (n, 8) columns via identity matmul on the idle MXU.

        Replaces five masked cross-sublane reductions per step; HIGHEST precision makes
        the "transpose" f32-exact.
        """
        return lax.dot_general(eyef, rows8, (((1,), (1,)), ((), ())),
                               precision=_HIGH, preferred_element_type=jnp.float32)

    def body(_, carry):
        px, py, vx, vy, ax, ay = carry                   # six (1, n) rows

        # desired directions e_a (stateutils.desired_directions), lane-dense
        gx, gy = dest_x - px, dest_y - py
        g2 = gx * gx + gy * gy
        inv_gn = jnp.where(g2 > 0.0, lax.rsqrt(g2), 0.0)
        ex, ey = gx * inv_gn, gy * inv_gn

        # driving force F0 = (pref_speed * e - v) / tau
        f0x = tau_inv * (pref * ex - vx)
        f0y = tau_inv * (pref * ey - vy)

        # beta-side potential invariants (rows), computed once per step
        sp = jnp.sqrt(vx * vx + vy * vy)                 # (1, n) speeds
        cx = POT_DELTA_T * sp * ex                       # delta_t * speed_b * e_b
        cy = POT_DELTA_T * sp * ey
        c2 = (POT_DELTA_T * sp) ** 2

        packed = jnp.concatenate([px, py, cx, cy, c2, pad3], axis=0)   # (8, n)
        cols = rows_to_cols(packed)                                    # (n, 8)
        px_c, py_c = cols[:, 0:1], cols[:, 1:2]
        cx_c, cy_c, c2_c = cols[:, 2:3], cols[:, 3:4], cols[:, 4:5]

        # pairwise displacement r_ab = r_a - r_b; entry [b, a] (beta sublane, alpha lane)
        rx = px - px_c                                   # (n, n)
        ry = py - py_c
        d2 = rx * rx + ry * ry
        inv_nr = jnp.where(d2 > 0.0, lax.rsqrt(d2), 0.0)
        nr = d2 * inv_nr                                 # |r_ab| (== |-r_ab| for FoV)

        if use_analytic_grad:
            # analytic f_ab = -dV/dr = (V0/sigma) * exp(-b/sigma) * db/dr
            sx = rx - cx_c                               # r_ab - delta_t*speed_b*e_b
            sy = ry - cy_c
            s2 = sx * sx + sy * sy
            inv_ns = jnp.where(s2 > 0.0, lax.rsqrt(s2), 0.0)
            ns = s2 * inv_ns
            sum_n = nr + ns
            in_sq = sum_n * sum_n - c2_c
            # NOTE: the 1e-12 cutoff zeroes the force exactly where the analytic gradient
            # diverges (near-contact pairs); same semantics as the previous version.
            r_is = jnp.where(in_sq > 1e-12, lax.rsqrt(in_sq), 0.0)
            sq = in_sq * r_is                            # = sqrt(in_sq) = 2*b
            coef = coef_c * jnp.exp(exp_k * sq) * sum_n * r_is
            coef = jnp.where(eye_b, 0.0, coef)           # exact diag zeroing
            fabx = coef * (rx * inv_nr + sx * inv_ns)
            faby = coef * (ry * inv_nr + sy * inv_ns)
        else:
            # finite-difference gradient (bit-parity with the socialforce package)
            def pot_value(rx_, ry_):
                nr_ = jnp.sqrt(rx_ * rx_ + ry_ * ry_)
                sx_ = rx_ - cx_c
                sy_ = ry_ - cy_c
                ns_ = jnp.sqrt(sx_ * sx_ + sy_ * sy_)
                in_ = (nr_ + ns_) ** 2 - c2_c
                in_ = jnp.maximum(jnp.where(eye_b, 0.0, in_), 0.0)
                return V0 * jnp.exp(exp_k * jnp.sqrt(in_))

            v = pot_value(rx, ry)
            fabx = (v - pot_value(rx + FD_DELTA, ry)) * (1.0 / FD_DELTA)
            faby = (v - pot_value(rx, ry + FD_DELTA)) * (1.0 / FD_DELTA)

        # FieldOfView weights w(e_a, -r_ab); |-r_ab| == nr (rsqrt pass reused).
        # No extra diag zeroing: f_ab is exactly zero on the diagonal in both paths.
        dotp = -(ex * rx + ey * ry)
        w = jnp.where(dotp > nr * COSPHI, 1.0, OUT_OF_VIEW)

        # total force F = F0 + sum_b w * f_ab  -- reduction over beta on the idle MXU
        Fx = f0x + jnp.dot(ones_row, w * fabx,
                           precision=_HIGH, preferred_element_type=jnp.float32)
        Fy = f0y + jnp.dot(ones_row, w * faby,
                           precision=_HIGH, preferred_element_type=jnp.float32)

        # LeapfrogIntegrator (lane-dense rows)
        npx = px + vx * dt + (0.5 * dt * dt) * Fx
        npy = py + vy * dt + (0.5 * dt * dt) * Fy
        nvx = vx + (0.5 * dt) * (ax + Fx)
        nvy = vy + (0.5 * dt) * (ay + Fy)

        # cap_velocity (guarded against 0/0 -> NaN)
        v2 = nvx * nvx + nvy * nvy
        inv_spn = jnp.where(v2 > 0.0, lax.rsqrt(v2), 0.0)
        factor = jnp.minimum(max_sp * inv_spn, 1.0)
        return npx, npy, nvx * factor, nvy * factor, Fx, Fy

    init = (s[0:1, :], s[1:2, :], s[2:3, :], s[3:4, :], s[4:5, :], s[5:6, :])
    px, py, vx, vy, ax, ay = lax.fori_loop(0, oversampling, body, init, unroll=False)

    # single lane-dense writeback after the last oversample step; the output VMEM window
    # is distinct from the (HBM-aliased) input window, so every row must be written.
    out_ref[0:1, :] = px
    out_ref[1:2, :] = py
    out_ref[2:3, :] = vx
    out_ref[3:4, :] = vy
    out_ref[4:5, :] = ax
    out_ref[5:6, :] = ay
    out_ref[6:10, :] = s[6:10, :]        # dest_x, dest_y, tau, pref_speed unchanged


# ---------------------------------------------------------------------------
# JAX glue: Simulator.normalize_state + single fused pallas_call
# ---------------------------------------------------------------------------
def normalize_state(state6, tau=TAU):
    """(n, 6)=[x,y,vx,vy,dx,dy] -> (n, 10)=[x,y,vx,vy,ax,ay,dx,dy,tau,pref_speed]."""
    n = state6.shape[0]
    accel = jnp.zeros((n, 2), dtype=state6.dtype)
    state = jnp.concatenate([state6[:, :4], accel, state6[:, 4:]], axis=-1)   # (n, 8)
    tau_col = jnp.full((n, 1), tau, dtype=state6.dtype)
    state = jnp.concatenate([state, tau_col], axis=-1)                        # (n, 9)
    pref = jnp.sqrt(jnp.sum(state[:, 2:4] ** 2, axis=-1, keepdims=True))      # speeds
    return jnp.concatenate([state, pref], axis=-1)                            # (n, 10)


def _forward_impl(state6, use_analytic_grad):
    state = normalize_state(state6)                       # (n, 10)
    n = state.shape[0]
    state_t = state.T                                     # (10, n): agents lane-dense
    kernel = partial(_sim_kernel, oversampling=OVERSAMPLING,
                     dt=DELTA_T / OVERSAMPLING,
                     use_analytic_grad=use_analytic_grad)
    out_t = pl.pallas_call(
        kernel,
        out_shape=jax.ShapeDtypeStruct((10, n), state.dtype),
        in_specs=[pl.BlockSpec(memory_space=pltpu.MemorySpace.VMEM)],
        out_specs=pl.BlockSpec(memory_space=pltpu.MemorySpace.VMEM),
        input_output_aliases={0: 0},
        compiler_params=pltpu.CompilerParams(vmem_limit_bytes=_VMEM_LIMIT_BYTES),
    )(state_t)
    return out_t.T                                        # back to the (n, 10) contract


simulator_forward = jax.jit(partial(_forward_impl, use_analytic_grad=True))
simulator_forward_fd = jax.jit(partial(_forward_impl, use_analytic_grad=False))


# ---------------------------------------------------------------------------
# Pure-JAX mirror of one PyTorch _step (finite-difference gradient) for checking
# ---------------------------------------------------------------------------
def _step_ref(state, dt):
    n = state.shape[0]
    pos, vel = state[:, 0:2], state[:, 2:4]
    acc, dest = state[:, 4:6], state[:, 6:8]
    tau, pref = state[:, 8:9], state[:, 9:10]

    dv = dest - pos
    nrm = jnp.sqrt(jnp.sum(dv * dv, axis=-1, keepdims=True))
    nrm = jnp.where(nrm == 0.0, 1.0, nrm)
    e = dv / nrm
    F0 = (pref * e - vel) / tau

    r_ab = pos[:, None, :] - pos[None, :, :]
    speeds = jnp.sqrt(jnp.sum(vel * vel, axis=-1))
    eye = jnp.eye(n, dtype=bool)

    def value(r):
        sp_b = speeds[None, :]
        e_b = e[None, :, :]
        nr = jnp.sqrt(jnp.sum(r * r, axis=-1))
        rs = r - POT_DELTA_T * sp_b[..., None] * e_b
        ns = jnp.sqrt(jnp.sum(rs * rs, axis=-1))
        in_sqrt = (nr + ns) ** 2 - (POT_DELTA_T * sp_b) ** 2
        in_sqrt = jnp.maximum(jnp.where(eye, 0.0, in_sqrt), 0.0)
        return V0 * jnp.exp(-0.5 * jnp.sqrt(in_sqrt) / SIGMA)

    v = value(r_ab)
    dx = jnp.array([[[FD_DELTA, 0.0]]], dtype=state.dtype)
    dy = jnp.array([[[0.0, FD_DELTA]]], dtype=state.dtype)
    grad = jnp.stack([(value(r_ab + dx) - v) / FD_DELTA,
                      (value(r_ab + dy) - v) / FD_DELTA], axis=-1)
    f_ab = -grad

    f = -r_ab
    in_sight = jnp.einsum('aj,abj->ab', e, f) > jnp.sqrt(jnp.sum(f * f, -1)) * COSPHI
    w = jnp.where(eye, 0.0, jnp.where(in_sight, 1.0, OUT_OF_VIEW))
    F = F0 + jnp.sum(w[..., None] * f_ab, axis=1)

    new_pos = pos + vel * dt + 0.5 * F * dt * dt
    new_vel = vel + 0.5 * (acc + F) * dt
    sp = jnp.sqrt(jnp.sum(new_vel * new_vel, axis=-1, keepdims=True))
    factor = jnp.minimum(pref * MAX_SPEED_MULT / sp, 1.0)
    new_vel = new_vel * factor
    return jnp.concatenate([new_pos, new_vel, F, dest, tau, pref], axis=1)


if __name__ == "__main__":
    key = jax.random.PRNGKey(0)
    n_ped = 8
    k1, k2, k3 = jax.random.split(key, 3)
    pos = jax.random.uniform(k1, (n_ped, 2), jnp.float32, 0.0, 8.0)
    vel = jax.random.normal(k2, (n_ped, 2), jnp.float32) * 0.5
    dest = jax.random.uniform(k3, (n_ped, 2), jnp.float32, 0.0, 8.0)
    state6 = jnp.concatenate([pos, vel, dest], axis=1)          # (8, 6)

    out = jax.block_until_ready(simulator_forward(state6))         # analytic fast path
    out_fd = jax.block_until_ready(simulator_forward_fd(state6))   # FD parity path
    assert out.shape == (n_ped, 10) and out.dtype == jnp.float32

    # pure-JAX mirror of the PyTorch module (finite-difference gradient)
    ref = normalize_state(state6)
    for _ in range(OVERSAMPLING):
        ref = _step_ref(ref, DELTA_T / OVERSAMPLING)
    ref = jax.block_until_ready(ref)

    # (1) finite-difference kernel path must match the reference closely
    err_fd = float(jnp.max(jnp.abs(out_fd - ref)))
    assert err_fd < 1e-2, f"FD-path mismatch vs reference: {err_fd}"

    # (2) analytic-gradient path: kinematics + constant columns must agree; the raw
    # force columns (4:6) differ from the FD reference by O(FD_DELTA * V'') by design.
    err_kin = float(jnp.max(jnp.abs(out[:, 0:4] - ref[:, 0:4])))
    err_cst = float(jnp.max(jnp.abs(out[:, 6:10] - ref[:, 6:10])))
    err_frc = float(jnp.max(jnp.abs(out[:, 4:6] - ref[:, 4:6])))
    assert err_kin < 5e-2, f"kinematics mismatch vs reference: {err_kin}"
    assert err_cst < 1e-5, f"constant-column mismatch vs reference: {err_cst}"
    assert err_frc < 2e-1, f"force-column mismatch vs reference: {err_frc}"

    print("KERNEL_OK")
</pallas_src>

<mosaic_0001>
module attributes {stable_mosaic.version = 11 : i64} {
  func.func @_sim_kernel(%arg0: memref<10x8xf32, #tpu.memory_space<vmem>>, %arg1: memref<10x8xf32, #tpu.memory_space<vmem>>) attributes {dimension_semantics = [], scalar_prefetch = 0 : i64, scratch_operands = 0 : i64, tpu.core_type = #tpu.core_type<tc>} {
    %c0 = arith.constant 0 : index
    %c0_0 = arith.constant 0 : index
    %0 = vector.load %arg0[%c0, %c0_0] : memref<10x8xf32, #tpu.memory_space<vmem>>, vector<10x8xf32>
    %1 = tpu.iota {dimensions = array<i32: 0>} : vector<8x8xi32>
    %2 = tpu.iota {dimensions = array<i32: 1>} : vector<8x8xi32>
    %3 = arith.cmpi eq, %1, %2 : vector<8x8xi32>
    %cst = arith.constant 1.000000e+00 : f32
    %cst_1 = arith.constant 0.000000e+00 : f32
    %4 = vector.broadcast %cst : f32 to vector<8x8xf32>
    %5 = vector.broadcast %cst_1 : f32 to vector<8x8xf32>
    %6 = arith.select %3, %4, %5 : vector<8x8xi1>, vector<8x8xf32>
    %cst_2 = arith.constant 1.000000e+00 : f32
    %7 = vector.broadcast %cst_2 : f32 to vector<1x8xf32>
    %cst_3 = arith.constant 0.000000e+00 : f32
    %8 = vector.broadcast %cst_3 : f32 to vector<3x8xf32>
    %9 = vector.extract_strided_slice %0 {offsets = [6, 0], sizes = [1, 8], strides = [1, 1]} : vector<10x8xf32> to vector<1x8xf32>
    %10 = vector.extract_strided_slice %0 {offsets = [7, 0], sizes = [1, 8], strides = [1, 1]} : vector<10x8xf32> to vector<1x8xf32>
    %11 = vector.extract_strided_slice %0 {offsets = [8, 0], sizes = [1, 8], strides = [1, 1]} : vector<10x8xf32> to vector<1x8xf32>
    %cst_4 = arith.constant 1.000000e+00 : f32
    %12 = vector.broadcast %cst_4 : f32 to vector<1x8xf32>
    %13 = arith.divf %12, %11 : vector<1x8xf32>
    %14 = vector.extract_strided_slice %0 {offsets = [9, 0], sizes = [1, 8], strides = [1, 1]} : vector<10x8xf32> to vector<1x8xf32>
    %cst_5 = arith.constant 1.300000e+00 : f32
    %15 = vector.broadcast %cst_5 : f32 to vector<1x8xf32>
    %16 = arith.mulf %14, %15 : vector<1x8xf32>
    %17 = vector.extract_strided_slice %0 {offsets = [0, 0], sizes = [1, 8], strides = [1, 1]} : vector<10x8xf32> to vector<1x8xf32>
    %18 = vector.extract_strided_slice %0 {offsets = [1, 0], sizes = [1, 8], strides = [1, 1]} : vector<10x8xf32> to vector<1x8xf32>
    %19 = vector.extract_strided_slice %0 {offsets = [2, 0], sizes = [1, 8], strides = [1, 1]} : vector<10x8xf32> to vector<1x8xf32>
    %20 = vector.extract_strided_slice %0 {offsets = [3, 0], sizes = [1, 8], strides = [1, 1]} : vector<10x8xf32> to vector<1x8xf32>
    %21 = vector.extract_strided_slice %0 {offsets = [4, 0], sizes = [1, 8], strides = [1, 1]} : vector<10x8xf32> to vector<1x8xf32>
    %22 = vector.extract_strided_slice %0 {offsets = [5, 0], sizes = [1, 8], strides = [1, 1]} : vector<10x8xf32> to vector<1x8xf32>
    %c0_i32 = arith.constant 0 : i32
    %c10_i32 = arith.constant 10 : i32
    %23 = arith.addi %c0_i32, %c10_i32 : i32
    %c1_i32 = arith.constant 1 : i32
    %24:6 = scf.for %arg2 = %c0_i32 to %23 step %c1_i32 iter_args(%arg3 = %17, %arg4 = %18, %arg5 = %19, %arg6 = %20, %arg7 = %21, %arg8 = %22) -> (vector<1x8xf32>, vector<1x8xf32>, vector<1x8xf32>, vector<1x8xf32>, vector<1x8xf32>, vector<1x8xf32>)  : i32 {
      %33 = arith.subf %9, %arg3 : vector<1x8xf32>
      %34 = arith.subf %10, %arg4 : vector<1x8xf32>
      %35 = arith.mulf %33, %33 : vector<1x8xf32>
      %36 = arith.mulf %34, %34 : vector<1x8xf32>
      %37 = arith.addf %35, %36 : vector<1x8xf32>
      %cst_14 = arith.constant 0.000000e+00 : f32
      %38 = vector.broadcast %cst_14 : f32 to vector<1x8xf32>
      %39 = arith.cmpf ogt, %37, %38 : vector<1x8xf32>
      %40 = math.rsqrt %37 : vector<1x8xf32>
      %cst_15 = arith.constant 0.000000e+00 : f32
      %41 = vector.broadcast %cst_15 : f32 to vector<1x8xf32>
      %42 = arith.select %39, %40, %41 : vector<1x8xi1>, vector<1x8xf32>
      %43 = arith.mulf %33, %42 : vector<1x8xf32>
      %44 = arith.mulf %34, %42 : vector<1x8xf32>
      %45 = arith.mulf %14, %43 : vector<1x8xf32>
      %46 = arith.subf %45, %arg5 : vector<1x8xf32>
      %47 = arith.mulf %13, %46 : vector<1x8xf32>
      %48 = arith.mulf %14, %44 : vector<1x8xf32>
      %49 = arith.subf %48, %arg6 : vector<1x8xf32>
      %50 = arith.mulf %13, %49 : vector<1x8xf32>
      %51 = arith.mulf %arg5, %arg5 : vector<1x8xf32>
      %52 = arith.mulf %arg6, %arg6 : vector<1x8xf32>
      %53 = arith.addf %51, %52 : vector<1x8xf32>
      %54 = math.sqrt %53 : vector<1x8xf32>
      %cst_16 = arith.constant 4.000000e-01 : f32
      %55 = vector.broadcast %cst_16 : f32 to vector<1x8xf32>
      %56 = arith.mulf %55, %54 : vector<1x8xf32>
      %57 = arith.mulf %56, %43 : vector<1x8xf32>
      %cst_17 = arith.constant 4.000000e-01 : f32
      %58 = vector.broadcast %cst_17 : f32 to vector<1x8xf32>
      %59 = arith.mulf %58, %54 : vector<1x8xf32>
      %60 = arith.mulf %59, %44 : vector<1x8xf32>
      %cst_18 = arith.constant 4.000000e-01 : f32
      %61 = vector.broadcast %cst_18 : f32 to vector<1x8xf32>
      %62 = arith.mulf %61, %54 : vector<1x8xf32>
      %63 = arith.mulf %62, %62 : vector<1x8xf32>
      %64 = tpu.concatenate %arg3, %arg4, %57, %60, %63, %8 in 0 : vector<1x8xf32>, vector<1x8xf32>, vector<1x8xf32>, vector<1x8xf32>, vector<1x8xf32>, vector<3x8xf32> -> vector<8x8xf32>
      %cst_19 = arith.constant dense<0.000000e+00> : vector<8x8xf32>
      %65 = tpu.matmul %6, %64, %cst_19 {dimension_numbers = #tpu.dot_dimension_numbers<[1], [1], [0], [0], [0, 0, 1, 0], [], []>, precision = #tpu.contract_precision<fp32>} : vector<8x8xf32>, vector<8x8xf32>, vector<8x8xf32> -> vector<8x8xf32>
      %66 = vector.extract_strided_slice %65 {offsets = [0, 0], sizes = [8, 1], strides = [1, 1]} : vector<8x8xf32> to vector<8x1xf32>
      %67 = vector.extract_strided_slice %65 {offsets = [0, 1], sizes = [8, 1], strides = [1, 1]} : vector<8x8xf32> to vector<8x1xf32>
      %68 = vector.extract_strided_slice %65 {offsets = [0, 2], sizes = [8, 1], strides = [1, 1]} : vector<8x8xf32> to vector<8x1xf32>
      %69 = vector.extract_strided_slice %65 {offsets = [0, 3], sizes = [8, 1], strides = [1, 1]} : vector<8x8xf32> to vector<8x1xf32>
      %70 = vector.extract_strided_slice %65 {offsets = [0, 4], sizes = [8, 1], strides = [1, 1]} : vector<8x8xf32> to vector<8x1xf32>
      %71 = vector.broadcast %arg3 : vector<1x8xf32> to vector<8x8xf32>
      %72 = vector.broadcast %66 : vector<8x1xf32> to vector<8x8xf32>
      %73 = arith.subf %71, %72 : vector<8x8xf32>
      %74 = vector.broadcast %arg4 : vector<1x8xf32> to vector<8x8xf32>
      %75 = vector.broadcast %67 : vector<8x1xf32> to vector<8x8xf32>
      %76 = arith.subf %74, %75 : vector<8x8xf32>
      %77 = arith.mulf %73, %73 : vector<8x8xf32>
      %78 = arith.mulf %76, %76 : vector<8x8xf32>
      %79 = arith.addf %77, %78 : vector<8x8xf32>
      %cst_20 = arith.constant 0.000000e+00 : f32
      %80 = vector.broadcast %cst_20 : f32 to vector<8x8xf32>
      %81 = arith.cmpf ogt, %79, %80 : vector<8x8xf32>
      %82 = math.rsqrt %79 : vector<8x8xf32>
      %cst_21 = arith.constant 0.000000e+00 : f32
      %83 = vector.broadcast %cst_21 : f32 to vector<8x8xf32>
      %84 = arith.select %81, %82, %83 : vector<8x8xi1>, vector<8x8xf32>
      %85 = arith.mulf %79, %84 : vector<8x8xf32>
      %86 = vector.broadcast %68 : vector<8x1xf32> to vector<8x8xf32>
      %87 = arith.subf %73, %86 : vector<8x8xf32>
      %88 = vector.broadcast %69 : vector<8x1xf32> to vector<8x8xf32>
      %89 = arith.subf %76, %88 : vector<8x8xf32>
      %90 = arith.mulf %87, %87 : vector<8x8xf32>
      %91 = arith.mulf %89, %89 : vector<8x8xf32>
      %92 = arith.addf %90, %91 : vector<8x8xf32>
      %cst_22 = arith.constant 0.000000e+00 : f32
      %93 = vector.broadcast %cst_22 : f32 to vector<8x8xf32>
      %94 = arith.cmpf ogt, %92, %93 : vector<8x8xf32>
      %95 = math.rsqrt %92 : vector<8x8xf32>
      %cst_23 = arith.constant 0.000000e+00 : f32
      %96 = vector.broadcast %cst_23 : f32 to vector<8x8xf32>
      %97 = arith.select %94, %95, %96 : vector<8x8xi1>, vector<8x8xf32>
      %98 = arith.mulf %92, %97 : vector<8x8xf32>
      %99 = arith.addf %85, %98 : vector<8x8xf32>
      %100 = arith.mulf %99, %99 : vector<8x8xf32>
      %101 = vector.broadcast %70 : vector<8x1xf32> to vector<8x8xf32>
      %102 = arith.subf %100, %101 : vector<8x8xf32>
      %cst_24 = arith.constant 9.99999996E-13 : f32
      %103 = vector.broadcast %cst_24 : f32 to vector<8x8xf32>
      %104 = arith.cmpf ogt, %102, %103 : vector<8x8xf32>
      %105 = math.rsqrt %102 : vector<8x8xf32>
      %cst_25 = arith.constant 0.000000e+00 : f32
      %106 = vector.broadcast %cst_25 : f32 to vector<8x8xf32>
      %107 = arith.select %104, %105, %106 : vector<8x8xi1>, vector<8x8xf32>
      %108 = arith.mulf %102, %107 : vector<8x8xf32>
      %cst_26 = arith.constant -1.66666663 : f32
      %109 = vector.broadcast %cst_26 : f32 to vector<8x8xf32>
      %110 = arith.mulf %109, %108 : vector<8x8xf32>
      %111 = math.exp %110 : vector<8x8xf32>
      %cst_27 = arith.constant 3.500000e+00 : f32
      %112 = vector.broadcast %cst_27 : f32 to vector<8x8xf32>
      %113 = arith.mulf %112, %111 : vector<8x8xf32>
      %114 = arith.mulf %113, %99 : vector<8x8xf32>
      %115 = arith.mulf %114, %107 : vector<8x8xf32>
      %cst_28 = arith.constant 0.000000e+00 : f32
      %116 = vector.broadcast %cst_28 : f32 to vector<8x8xf32>
      %117 = arith.select %3, %116, %115 : vector<8x8xi1>, vector<8x8xf32>
      %118 = arith.mulf %73, %84 : vector<8x8xf32>
      %119 = arith.mulf %87, %97 : vector<8x8xf32>
      %120 = arith.addf %118, %119 : vector<8x8xf32>
      %121 = arith.mulf %117, %120 : vector<8x8xf32>
      %122 = arith.mulf %76, %84 : vector<8x8xf32>
      %123 = arith.mulf %89, %97 : vector<8x8xf32>
      %124 = arith.addf %122, %123 : vector<8x8xf32>
      %125 = arith.mulf %117, %124 : vector<8x8xf32>
      %126 = vector.broadcast %43 : vector<1x8xf32> to vector<8x8xf32>
      %127 = arith.mulf %126, %73 : vector<8x8xf32>
      %128 = vector.broadcast %44 : vector<1x8xf32> to vector<8x8xf32>
      %129 = arith.mulf %128, %76 : vector<8x8xf32>
      %130 = arith.addf %127, %129 : vector<8x8xf32>
      %cst_29 = arith.constant 0.000000e+00 : f32
      %131 = vector.broadcast %cst_29 : f32 to vector<8x8xf32>
      %132 = arith.subf %131, %130 : vector<8x8xf32>
      %cst_30 = arith.constant -0.173648179 : f32
      %133 = vector.broadcast %cst_30 : f32 to vector<8x8xf32>
      %134 = arith.mulf %85, %133 : vector<8x8xf32>
      %135 = arith.cmpf ogt, %132, %134 : vector<8x8xf32>
      %cst_31 = arith.constant 1.000000e+00 : f32
      %cst_32 = arith.constant 5.000000e-01 : f32
      %136 = vector.broadcast %cst_31 : f32 to vector<8x8xf32>
      %137 = vector.broadcast %cst_32 : f32 to vector<8x8xf32>
      %138 = arith.select %135, %136, %137 : vector<8x8xi1>, vector<8x8xf32>
      %139 = arith.mulf %138, %121 : vector<8x8xf32>
      %cst_33 = arith.constant dense<0.000000e+00> : vector<1x8xf32>
      %140 = tpu.matmul %7, %139, %cst_33 {dimension_numbers = #tpu.dot_dimension_numbers<[1], [0], [0], [1], [0, 0, 1, 1], [], []>, precision = #tpu.contract_precision<fp32>} : vector<1x8xf32>, vector<8x8xf32>, vector<1x8xf32> -> vector<1x8xf32>
      %141 = arith.addf %47, %140 : vector<1x8xf32>
      %142 = arith.mulf %138, %125 : vector<8x8xf32>
      %cst_34 = arith.constant dense<0.000000e+00> : vector<1x8xf32>
      %143 = tpu.matmul %7, %142, %cst_34 {dimension_numbers = #tpu.dot_dimension_numbers<[1], [0], [0], [1], [0, 0, 1, 1], [], []>, precision = #tpu.contract_precision<fp32>} : vector<1x8xf32>, vector<8x8xf32>, vector<1x8xf32> -> vector<1x8xf32>
      %144 = arith.addf %50, %143 : vector<1x8xf32>
      %cst_35 = arith.constant 4.000000e-02 : f32
      %145 = vector.broadcast %cst_35 : f32 to vector<1x8xf32>
      %146 = arith.mulf %arg5, %145 : vector<1x8xf32>
      %147 = arith.addf %arg3, %146 : vector<1x8xf32>
      %cst_36 = arith.constant 8.000000e-04 : f32
      %148 = vector.broadcast %cst_36 : f32 to vector<1x8xf32>
      %149 = arith.mulf %148, %141 : vector<1x8xf32>
      %150 = arith.addf %147, %149 : vector<1x8xf32>
      %cst_37 = arith.constant 4.000000e-02 : f32
      %151 = vector.broadcast %cst_37 : f32 to vector<1x8xf32>
      %152 = arith.mulf %arg6, %151 : vector<1x8xf32>
      %153 = arith.addf %arg4, %152 : vector<1x8xf32>
      %cst_38 = arith.constant 8.000000e-04 : f32
      %154 = vector.broadcast %cst_38 : f32 to vector<1x8xf32>
      %155 = arith.mulf %154, %144 : vector<1x8xf32>
      %156 = arith.addf %153, %155 : vector<1x8xf32>
      %157 = arith.addf %arg7, %141 : vector<1x8xf32>
      %cst_39 = arith.constant 2.000000e-02 : f32
      %158 = vector.broadcast %cst_39 : f32 to vector<1x8xf32>
      %159 = arith.mulf %158, %157 : vector<1x8xf32>
      %160 = arith.addf %arg5, %159 : vector<1x8xf32>
      %161 = arith.addf %arg8, %144 : vector<1x8xf32>
      %cst_40 = arith.constant 2.000000e-02 : f32
      %162 = vector.broadcast %cst_40 : f32 to vector<1x8xf32>
      %163 = arith.mulf %162, %161 : vector<1x8xf32>
      %164 = arith.addf %arg6, %163 : vector<1x8xf32>
      %165 = arith.mulf %160, %160 : vector<1x8xf32>
      %166 = arith.mulf %164, %164 : vector<1x8xf32>
      %167 = arith.addf %165, %166 : vector<1x8xf32>
      %cst_41 = arith.constant 0.000000e+00 : f32
      %168 = vector.broadcast %cst_41 : f32 to vector<1x8xf32>
      %169 = arith.cmpf ogt, %167, %168 : vector<1x8xf32>
      %170 = math.rsqrt %167 : vector<1x8xf32>
      %cst_42 = arith.constant 0.000000e+00 : f32
      %171 = vector.broadcast %cst_42 : f32 to vector<1x8xf32>
      %172 = arith.select %169, %170, %171 : vector<1x8xi1>, vector<1x8xf32>
      %173 = arith.mulf %16, %172 : vector<1x8xf32>
      %cst_43 = arith.constant 1.000000e+00 : f32
      %174 = vector.broadcast %cst_43 : f32 to vector<1x8xf32>
      %175 = arith.minimumf %173, %174 : vector<1x8xf32>
      %176 = arith.mulf %160, %175 : vector<1x8xf32>
      %177 = arith.mulf %164, %175 : vector<1x8xf32>
      scf.yield %150, %156, %176, %177, %141, %144 : vector<1x8xf32>, vector<1x8xf32>, vector<1x8xf32>, vector<1x8xf32>, vector<1x8xf32>, vector<1x8xf32>
    }
    %c0_6 = arith.constant 0 : index
    %c0_7 = arith.constant 0 : index
    %25 = vector.load %arg1[%c0_6, %c0_7] : memref<10x8xf32, #tpu.memory_space<vmem>>, vector<1x8xf32>
    tpu.vector_store %arg1[%c0_6, %c0_7], %24#0 {strides = array<i32>} : memref<10x8xf32, #tpu.memory_space<vmem>>, vector<1x8xf32>,
    %c1 = arith.constant 1 : index
    %c0_8 = arith.constant 0 : index
    %26 = vector.load %arg1[%c1, %c0_8] : memref<10x8xf32, #tpu.memory_space<vmem>>, vector<1x8xf32>
    tpu.vector_store %arg1[%c1, %c0_8], %24#1 {strides = array<i32>} : memref<10x8xf32, #tpu.memory_space<vmem>>, vector<1x8xf32>,
    %c2 = arith.constant 2 : index
    %c0_9 = arith.constant 0 : index
    %27 = vector.load %arg1[%c2, %c0_9] : memref<10x8xf32, #tpu.memory_space<vmem>>, vector<1x8xf32>
    tpu.vector_store %arg1[%c2, %c0_9], %24#2 {strides = array<i32>} : memref<10x8xf32, #tpu.memory_space<vmem>>, vector<1x8xf32>,
    %c3 = arith.constant 3 : index
    %c0_10 = arith.constant 0 : index
    %28 = vector.load %arg1[%c3, %c0_10] : memref<10x8xf32, #tpu.memory_space<vmem>>, vector<1x8xf32>
    tpu.vector_store %arg1[%c3, %c0_10], %24#3 {strides = array<i32>} : memref<10x8xf32, #tpu.memory_space<vmem>>, vector<1x8xf32>,
    %c4 = arith.constant 4 : index
    %c0_11 = arith.constant 0 : index
    %29 = vector.load %arg1[%c4, %c0_11] : memref<10x8xf32, #tpu.memory_space<vmem>>, vector<1x8xf32>
    tpu.vector_store %arg1[%c4, %c0_11], %24#4 {strides = array<i32>} : memref<10x8xf32, #tpu.memory_space<vmem>>, vector<1x8xf32>,
    %c5 = arith.constant 5 : index
    %c0_12 = arith.constant 0 : index
    %30 = vector.load %arg1[%c5, %c0_12] : memref<10x8xf32, #tpu.memory_space<vmem>>, vector<1x8xf32>
    tpu.vector_store %arg1[%c5, %c0_12], %24#5 {strides = array<i32>} : memref<10x8xf32, #tpu.memory_space<vmem>>, vector<1x8xf32>,
    %31 = vector.extract_strided_slice %0 {offsets = [6, 0], sizes = [4, 8], strides = [1, 1]} : vector<10x8xf32> to vector<4x8xf32>
    %c6 = arith.constant 6 : index
    %c0_13 = arith.constant 0 : index
    %32 = vector.load %arg1[%c6, %c0_13] : memref<10x8xf32, #tpu.memory_space<vmem>>, vector<4x8xf32>
    tpu.vector_store %arg1[%c6, %c0_13], %31 {strides = array<i32>} : memref<10x8xf32, #tpu.memory_space<vmem>>, vector<4x8xf32>,
    return
  }
}

</mosaic_0001>

<bundles_post_ra>
// kernel: _forward_impl.1
= control target key start
LH: loop header
LB: loop body
LE: loop exit
PB: predicated region body
PF: predicated region fallthrough
CT: control target
= control target key end

     0   :  { %v10_v0 = vlaneseq  ;;  %v1925_v8 = vmov 0.0   ;;  %s2181_s0 = inlined_call_operand.vmem [shape: f32[10,8], index: 0, kind: input, shape index: {}, may-alias: {0,1}]   ;;  %s2182_s1 = inlined_call_operand.vmem [shape: f32[10,8], index: 1, kind: output, shape index: {}, may-alias: {0,1}]  }
   0x1   :  { %v1948_v1 = vld [vmem:[%s2181_s0] sm:$0xff]   ;;  %v1953_v2 = vld [vmem:[%s2181_s0 + $0x8] sm:$0x3]  ;;  %s1990_s0 = smov 0  }
   0x2   :  { %v1955_v3 = vshrl.u32 %v10_v0, 7  ;;  %v1957_v4 = vand.u32 127, %v10_v0  ;;  %1847 = vrcp.f32 %v1953_v2  ;;  %v1961_v5 = vmul.f32 1.3, %v1953_v2 }
   0x3   :  { %v20_v6 = vrot.slane %v1948_v1, 4   ;;  %v22_v7 = vrot.slane %v1948_v1, 5   ;;  %v2183_v11 = vmov %v1948_v1  ;;  %v2184_v12 = vmov %v1948_v1 }
   0x4   :  { %vm14_vm0 = vcmp.eq.s32.totalorder %v1955_v3, %v1957_v4  ;;  %v2185_v13 = vmov %v1948_v1  ;;  %v2186_v14 = vmov %v1948_v1 }
   0x5   :  { %v1970_v9 = vsel %vm14_vm0, 1.0, %v1925_v8 }
   0xf   :  { %v1972_v10 = vpop.eup %1847 }
  0x10 LB: > { %v1926_v15 = vmov 0.0   ;;  %v41_v16 = vrot.slane %v1915_v13, 2  ;;  %v82_v17 = vmul.f32 %v1911_v12, %v1911_v12  ;;  %v83_v18 = vmul.f32 %v1907_v11, %v1907_v11  ;;  %s29_s0 = sadd.s32 1, %s1923_s0   ;;  %s1923_s0 = sphi %s1990_s0, %s29_s0   ;;  %v1919_v14 = vphi %v2186_v14, %v2192_v14   ;;  %v1915_v13 = vphi %v2185_v13, %v2191_v13   ;;  %v1911_v12 = vphi %v2184_v12, %v2190_v12   ;;  %v1907_v11 = vphi %v2183_v11, %v2189_v11   ;;  %v1903_v6 = vphi %v20_v6, %v2188_v6   ;;  %v1899_v7 = vphi %v22_v7, %v2187_v7  }
  0x11   : > { %1691 = vmatprep.subr.mxu0 %v1926_v15  ;;  %1696 = vmatprep.subr.mxu1 %v1926_v15  ;;  %v37_v19 = vrot.slane %v1919_v14, 2  ;;  %vm1927_vm1 = vmmov 0   ;;  %vm119_vm5 = vcmask 64512   ;;  %vm109_vm6 = vcmask 1040384   ;;  %p26_p0 = scmp.ge.s32.totalorder %s29_s0, 10  }
  0x12   : > { %v43_v20 = vsub.f32 %v1948_v1, %v41_v16  ;;  %v85_v21 = vrot.slane %v83_v18, 1  ;;  %1693 = vmatprep.mubr.msk.f32.mxu0 %vm1927_vm1, %v1926_v15  ;;  %1698 = vmatprep.mubr.msk.f32.mxu1 %vm1927_vm1, %v1926_v15  ;;  %v121_v38 = vsel %vm119_vm5, %v1970_v9, 0  ;;  %v110_v45 = vsel %vm109_vm6, %v1919_v14, %v1915_v13 }
  0x13   : > { %v39_v22 = vsub.f32 %v1948_v1, %v37_v19  ;;  %v193_v42 = vsub.f32 %v121_v38, %v121_v38  ;;  %vm111_vm7 = vcmask 1041408   ;;  %vm113_vm8 = vcmask 1042432  }
  0x14   : > { %v45_v23 = vmul.f32 %v43_v20, %v43_v20  ;;  %v87_v24 = vadd.f32 %v85_v21, %v82_v17  ;;  %vm115_vm9 = vcmask 1043456   ;;  %vm117_vm10 = vcmask 1044480  }
  0x15   : > { %v44_v25 = vmul.f32 %v39_v22, %v39_v22  ;;  %v194_v49 = vand.u32 4294901760, %v193_v42  ;;  %v1928_v62 = vmov 2   ;;  %v1929_v63 = vmov 0  }
  0x16   : > { %v47_v26 = vrot.slane %v45_v23, 1  ;;  %1855 = vrsqrt.f32 %v87_v24  ;;  %vm90_vm2 = vcmp.eq.f32.partialorder %v87_v24, inf  ;;  %v93_v29 = vand.u32 2147483648, %v87_v24  ;;  %1851 = vset.pattern.permute.xlu1 %v1928_v62  ;;  %1849 = vset.pattern.permute.xlu0 %v1929_v63 }
  0x17   : > { %vm92_vm3 = vcmp.eq.f32.partialorder %v87_v24, 0.0  ;;  %v195_v53 = vsub.f32 %v193_v42, %v194_v49  ;;  %v643_v38 = vsub.s32 6, %v1955_v3 }
  0x18   : > { %v49_v27 = vadd.f32 %v47_v26, %v44_v25 }
  0x19   : > { %v196_v57 = vand.u32 4294901760, %v195_v53 }
  0x1a   : > { %1857 = vrsqrt.f32 %v49_v27  ;;  %vm50_vm4 = vcmp.gt.f32.partialorder %v49_v27, 0.0 }
  0x23   : > { %v1856_v28 = vpop.eup %1855 }
  0x24   : > { %v89_v30 = vmul.f32 %v1856_v28, %v87_v24 }
  0x26   : > { %v91_v31 = vsel %vm90_vm2, %v87_v24, %v89_v30  ;;  %vm1607_vm2 = vcmask (%p26_p0), 58369  }
  0x27   : > { %v1858_v32 = vpop.eup %1857  ;;  %v94_v33 = vsel %vm92_vm3, %v93_v29, %v91_v31  ;;  %v1930_v31 = vmov 3   ;;  %vm1609_vm3 = vcmask (%p26_p0), 59394  }
  0x28   : > { %v52_v34 = vsel %vm50_vm4, %v1858_v32, 0.0  ;;  %v95_v35 = vmul.f32 0.4, %v94_v33  ;;  %v1931_v32 = vmov 1   ;;  %v1932_v33 = vmov 4  }
  0x29   : > { %v2027_v36 = vmul.f32 %v52_v34, %v39_v22  ;;  %v55_v37 = vrot.slane %v52_v34, 7  ;;  %v574_v34 = vsub.s32 0, %v1955_v3  ;;  %vm1611_vm4 = vcmask (%p26_p0), 60419  }
  0x2a   : > { %v102_v41 = vmul.f32 %v95_v35, %v95_v35 }
  0x2b   : > { %v2031_v39 = vmul.f32 %v55_v37, %v43_v20  ;;  %v96_v40 = vrot.slane %v2027_v36, 4  ;;  %v584_v37 = vsub.s32 1, %v1955_v3 }
  0x2c   : > { %v107_v47 = vrot.slane %v102_v41, 6  ;;  %v648_v41 = vsub.s32 7, %v1955_v3 }
  0x2d   : > { %v98_v43 = vmul.f32 %v96_v40, %v95_v35  ;;  %v99_v44 = vrot.slane %v2031_v39, 5 }
  0x2f   : > { %v101_v46 = vmul.f32 %v99_v44, %v95_v35  ;;  %v112_v48 = vsel %vm111_vm7, %v110_v45, %v98_v43  ;;  %v575_v35 = vrot.slane %v1919_v14, %v574_v34  ;;  %v585_v44 = vrot.slane %v1915_v13, %v584_v37 }
  0x30   : > { %v644_v45 = vrot.slane %v2027_v36, %v643_v38 }
  0x31   : > { %v104_v50 = vrot.slane %v101_v46, 7  ;;  %v649_v46 = vrot.slane %v2031_v39, %v648_v41 }
  0x33   : > { %v114_v51 = vsel %vm113_vm8, %v112_v48, %v104_v50 }
  0x34   : > { %v116_v52 = vsel %vm115_vm9, %v114_v51, %v107_v47 }
  0x35   : > { %v118_v54 = vsel %vm117_vm10, %v116_v52, 0.0 }
  0x36   : > { %v124_v55 = vsel %vm119_vm5, %v118_v54, 0 }
  0x37   : > { %v157_v56 = vand.u32 4294901760, %v124_v55 }
  0x39   : > { %1692 = vmatpush3.xpose.msra.mxu0 %v157_v56  ;;  %v234_v58 = vsub.f32 %v124_v55, %v157_v56 }
  0x3a   : > { %1701 = vmatprep.subr.mxu0 %v1926_v15 }
  0x3b   : > { %v235_v59 = vand.u32 4294901760, %v234_v58 }
  0x3c   : > { %1694 = vmatmul.mubr.f32.vlgmr.msra.gmra.mxu0 %v196_v57 }
  0x3d   : > { %v236_v60 = vsub.f32 %v234_v58, %v235_v59  ;;  %1702 = vmatpush3.xpose.msra.mxu0 %v234_v58  ;;  %1703 = vmatprep.mubr.msk.f32.mxu0 %vm1927_vm1, %v1926_v15 }
  0x3e   : > { %1711 = vmatprep.subr.mxu0 %v1926_v15 }
  0x3f   : > { %v237_v61 = vand.u32 4294901760, %v236_v60 }
  0x40   : > { %1704 = vmatmul.mubr.f32.vlgmr.msra.gmra.mxu0 %v193_v42 }
  0x41   : > { %1697 = vmatpush3.xpose.msra.mxu1 %v237_v61  ;;  %1712 = vmatpush3.xpose.msra.mxu0 %v235_v59 }
  0x42   : > { %1706 = vmatprep.subr.mxu1 %v1926_v15  ;;  %1713 = vmatprep.mubr.msk.f32.mxu0 %vm1927_vm1, %v1926_v15 }
  0x43   : > { %1721 = vmatprep.subr.mxu0 %v1926_v15 }
  0x44   : > { %1699 = vmatmul.mubr.msk.f32.vlgmr.msra.gmra.mxu1 %vm119_vm5, %v1970_v9  ;;  %1714 = vmatmul.mubr.msk.f32.vlgmr.msra.gmra.mxu0 %vm119_vm5, %v1970_v9 }
  0x45   : > { %1707 = vmatpush3.xpose.msra.mxu1 %v157_v56  ;;  %1708 = vmatprep.mubr.msk.f32.mxu1 %vm1927_vm1, %v1926_v15 }
  0x46   : > { %1716 = vmatprep.subr.mxu1 %v1926_v15  ;;  %1723 = vmatprep.mubr.msk.f32.mxu0 %vm1927_vm1, %v1926_v15 }
  0x48   : > { %1709 = vmatmul.mubr.f32.vlgmr.msra.gmra.mxu1 %v194_v49 }
  0x49   : > { %1717 = vmatpush3.xpose.msra.mxu1 %v157_v56  ;;  %1718 = vmatprep.mubr.msk.f32.mxu1 %vm1927_vm1, %v1926_v15 }
  0x4a   : > { %1726 = vmatprep.subr.mxu1 %v1926_v15 }
  0x4c   : > { %1719 = vmatmul.mubr.msk.f32.vlgmr.msra.gmra.mxu1 %vm119_vm5, %v1970_v9 }
  0x4d   : > { %1728 = vmatprep.mubr.msk.f32.mxu1 %vm1927_vm1, %v1926_v15 }
  0xfc   : > { %v198_v0 = vpop.f32.mrf.mxu0 }
  0xfe   : > { %v1695_v8 = vpop.f32.mrf.mxu0 }
 0x100   : > { %v348_v16 = vpop.f32.mrf.mxu0 }
 0x102   : > { %v1705_v17 = vpop.f32.mrf.mxu0 }
 0x104   : > { %v274_v18 = vpop.f32.mrf.mxu1  ;;  %v496_v19 = vpop.f32.mrf.mxu0 }
 0x105   : > { %v275_v20 = vadd.f32 %v274_v18, %v198_v0 }
 0x106   : > { %v1700_v21 = vpop.f32.mrf.mxu1  ;;  %v1715_v22 = vpop.f32.mrf.mxu0 }
 0x107   : > { %v349_v23 = vadd.f32 %v348_v16, %v275_v20 }
 0x108   : > { %v422_v24 = vpop.f32.mrf.mxu1 }
 0x109   : > { %v423_v25 = vadd.f32 %v422_v24, %v349_v23 }
 0x10a   : > { %v1710_v26 = vpop.f32.mrf.mxu1 }
 0x10b   : > { %v497_v27 = vadd.f32 %v496_v19, %v423_v25 }
 0x10c   : > { %v568_v28 = vpop.f32.mrf.mxu1 }
 0x10d   : > { %v569_v29 = vadd.f32 %v568_v28, %v497_v27 }
 0x10e   : > { %v1720_v30 = vpop.f32.mrf.mxu1 }
 0x10f   : > { %599 = vperm.xlu1 %1851, %v569_v29   ;;  %578 = vperm.xlu0 %1849, %v569_v29  }
 0x113   : > { %1852 = vset.pattern.permute.xlu1 %v1930_v31  ;;  %1850 = vset.pattern.permute.xlu0 %v1931_v32 }
 0x114   : > { %604 = vperm.xlu1 %1852, %v569_v29   ;;  %587 = vperm.xlu0 %1850, %v569_v29  }
 0x118   : > { %1853 = vset.pattern.permute.xlu1 %v1932_v33  ;;  %1854 = vset.pattern.permute.xlu0 %v1932_v33  ;;  %v658_v33 = vsel %vm119_vm5, 1.0, %v1929_v63 }
 0x119   : > { %618 = vperm.xlu1 %1853, %v569_v29   ;;  %v727_v34 = vsub.f32 %v658_v33, %v658_v33 }
 0x18a   : > { %v579_v40 = vpop.permute.xlu0 %578  ;;  %v600_v42 = vpop.permute.xlu1 %599 }
 0x18b   : > { %v581_v43 = vsub.f32 %v575_v35, %v579_v40  ;;  %v2073_v40 = vand.u32 4294901760, %v727_v34 }
 0x18d   : > { %v602_v48 = vsub.f32 %v581_v43, %v600_v42  ;;  %v591_v50 = vmul.f32 %v581_v43, %v581_v43  ;;  %v645_v52 = vmul.f32 %v644_v45, %v581_v43  ;;  %v729_v45 = vsub.f32 %v727_v34, %v2073_v40 }
 0x18f   : > { %v588_v47 = vpop.permute.xlu0 %587  ;;  %v605_v51 = vpop.permute.xlu1 %604  ;;  %v608_v56 = vmul.f32 %v602_v48, %v602_v48 }
 0x190   : > { %v590_v49 = vsub.f32 %v585_v44, %v588_v47 }
 0x192   : > { %v592_v53 = vmul.f32 %v590_v49, %v590_v49  ;;  %v607_v54 = vsub.f32 %v590_v49, %v605_v51  ;;  %v650_v55 = vmul.f32 %v649_v46, %v590_v49  ;;  %v730_v51 = vand.u32 4294901760, %v729_v45 }
 0x194   : > { %v593_v57 = vadd.f32 %v592_v53, %v591_v50  ;;  %v609_v58 = vmul.f32 %v607_v54, %v607_v54  ;;  %v651_v59 = vadd.f32 %v650_v55, %v645_v52  ;;  %v619_v26 = vpop.permute.xlu1 %618 }
 0x196   : > { %1859 = vrsqrt.f32 %v593_v57  ;;  %v610_v60 = vadd.f32 %v609_v58, %v608_v56  ;;  %vm594_vm11 = vcmp.gt.f32.partialorder %v593_v57, 0.0  ;;  %v652_v42 = vsub.f32 0.0, %v651_v59 }
 0x198   : > { %1861 = vrsqrt.f32 %v610_v60  ;;  %vm611_vm12 = vcmp.gt.f32.partialorder %v610_v60, 0.0 }
 0x1a3   : > { %v1860_v61 = vpop.eup %1859 }
 0x1a4   : > { %v596_v62 = vsel %vm594_vm11, %v1860_v61, 0.0 }
 0x1a5   : > { %v1862_v0 = vpop.eup %1861  ;;  %v637_v8 = vmul.f32 %v596_v62, %v590_v49  ;;  %v597_v16 = vmul.f32 %v596_v62, %v593_v57  ;;  %v633_v19 = vmul.f32 %v596_v62, %v581_v43 }
 0x1a6   : > { %v613_v17 = vsel %vm611_vm12, %v1862_v0, 0.0  ;;  %v59_v0 = vrot.slane %v2027_v36, 5  ;;  %v71_v36 = vrot.slane %v2031_v39, 6 }
 0x1a7   : > { %v614_v18 = vmul.f32 %v613_v17, %v610_v60  ;;  %v634_v20 = vmul.f32 %v613_v17, %v602_v48  ;;  %v638_v21 = vmul.f32 %v613_v17, %v607_v54  ;;  %v653_v38 = vmul.f32 -0.17364818, %v597_v16 }
 0x1a8   : > { %v1933_v48 = vmov 0.5   ;;  %v1934_v60 = vmov 1.0   ;;  %v61_v17 = vmul.f32 %v59_v0, %v1953_v2 }
 0x1a9   : > { %v615_v22 = vadd.f32 %v614_v18, %v597_v16  ;;  %v635_v23 = vadd.f32 %v634_v20, %v633_v19  ;;  %v639_v24 = vadd.f32 %v638_v21, %v637_v8  ;;  %vm654_vm14 = vcmp.gt.f32.partialorder %v652_v42, %v653_v38 }
 0x1aa   : > { %v655_v63 = vsel %vm654_vm14, 1.0, %v1933_v48  ;;  %v63_v18 = vrot.slane %v1911_v12, 1  ;;  %v73_v38 = vmul.f32 %v71_v36, %v1953_v2 }
 0x1ab   : > { %v616_v25 = vmul.f32 %v615_v22, %v615_v22 }
 0x1ac   : > { %v65_v21 = vsub.f32 %v61_v17, %v63_v18 }
 0x1ad   : > { %v621_v27 = vsub.f32 %v616_v25, %v619_v26 }
 0x1ae   : > { %v67_v26 = vrot.slane %v65_v21, 1 }
 0x1af   : > { %1863 = vrsqrt.f32 %v621_v27  ;;  %vm622_vm13 = vcmp.gt.f32.partialorder %v621_v27, 1e-12 }
 0x1b0   : > { %v69_v33 = vmul.f32 %v1972_v10, %v67_v26 }
 0x1bc   : > { %v1864_v28 = vpop.eup %1863 }
 0x1bd   : > { %v624_v29 = vsel %vm622_vm13, %v1864_v28, 0.0  ;;  %v1555_v28 = vmul.f32 0.04, %v1911_v12 }
 0x1be   : > { %v625_v30 = vmul.f32 %v624_v29, %v621_v27 }
 0x1c0   : > { %v626_v31 = vmul.f32 -1.6666666, %v625_v30 }
 0x1c2   : > { %v627_v32 = vmul.f32 1.442695, %v626_v31 }
 0x1c4   : > { %1865 = vpow2.f32 %v627_v32 }
 0x1d1   : > { %v1866_v35 = vpop.eup %1865 }
 0x1d2   : > { %v629_v37 = vmul.f32 3.5, %v1866_v35  ;;  %v1557_v35 = vrot.slane %v1555_v28, 2 }
 0x1d4   : > { %v630_v41 = vmul.f32 %v629_v37, %v615_v22  ;;  %v1559_v39 = vadd.f32 %v1919_v14, %v1557_v35 }
 0x1d6   : > { %v631_v43 = vmul.f32 %v630_v41, %v624_v29 }
 0x1d8   : > { %v632_v44 = vsel %vm14_vm0, 0.0, %v631_v43  ;;  %vm1615_vm0 = vcmask (%p26_p0), 64518  }
 0x1d9   : > { %v636_v46 = vmul.f32 %v635_v23, %v632_v44  ;;  %v640_v47 = vmul.f32 %v639_v24, %v632_v44  ;;  %1616 = vst.msk [vmem:[%s2182_s1] sm:$0xc0] (%p26_p0), %vm1615_vm0, %v1948_v1 }
 0x1db   : > { %v656_v49 = vmul.f32 %v655_v63, %v636_v46  ;;  %v1107_v50 = vmul.f32 %v655_v63, %v640_v47 }
 0x1dd   : > { %v691_v52 = vand.u32 4294901760, %v656_v49  ;;  %v1139_v54 = vand.u32 4294901760, %v1107_v50 }
 0x1df   : > { %1722 = vmatpush3.msra.mxu0 %v691_v52  ;;  %v768_v53 = vsub.f32 %v656_v49, %v691_v52  ;;  %v1216_v57 = vsub.f32 %v1107_v50, %v1139_v54 }
 0x1e0   : > { %1724 = vmatmul.mubr.f32.vlgmr.msra.gmra.mxu0 %v730_v51  ;;  %1731 = vmatprep.subr.mxu0 %v1926_v15 }
 0x1e1   : > { %1732 = vmatpush3.msra.mxu0 %v768_v53  ;;  %1733 = vmatprep.mubr.msk.f32.mxu0 %vm1927_vm1, %v1926_v15  ;;  %v769_v55 = vand.u32 4294901760, %v768_v53  ;;  %v1217_v59 = vand.u32 4294901760, %v1216_v57 }
 0x1e2   : > { %1741 = vmatprep.subr.mxu0 %v1926_v15 }
 0x1e3   : > { %v770_v56 = vsub.f32 %v768_v53, %v769_v55  ;;  %v1218_v61 = vsub.f32 %v1216_v57, %v1217_v59 }
 0x1e4   : > { %1734 = vmatmul.mubr.f32.vlgmr.msra.gmra.mxu0 %v727_v34 }
 0x1e5   : > { %1742 = vmatpush3.msra.mxu0 %v769_v55  ;;  %v771_v58 = vand.u32 4294901760, %v770_v56  ;;  %1743 = vmatprep.mubr.msk.f32.mxu0 %vm1927_vm1, %v1926_v15  ;;  %v1219_v62 = vand.u32 4294901760, %v1218_v61 }
 0x1e6   : > { %1751 = vmatprep.subr.mxu0 %v1926_v15 }
 0x1e7   : > { %1727 = vmatpush3.msra.mxu1 %v771_v58  ;;  %v1562_v58 = vmul.f32 0.04, %v1907_v11 }
 0x1e8   : > { %1729 = vmatmul.mubr.msk.f32.vlgmr.msra.gmra.mxu1 %vm119_vm5, %v1934_v60  ;;  %1736 = vmatprep.subr.mxu1 %v1926_v15 }
 0x1e9   : > { %1744 = vmatmul.mubr.msk.f32.vlgmr.msra.gmra.mxu0 %vm119_vm5, %v1934_v60  ;;  %1737 = vmatpush3.msra.mxu1 %v691_v52 }
 0x1ea   : > { %1752 = vmatpush3.msra.mxu0 %v1139_v54  ;;  %1738 = vmatprep.mubr.msk.f32.mxu1 %vm1927_vm1, %v1926_v15 }
 0x1eb   : > { %1746 = vmatprep.subr.mxu1 %v1926_v15  ;;  %1753 = vmatprep.mubr.msk.f32.mxu0 %vm1927_vm1, %v1926_v15 }
 0x1ec   : > { %1761 = vmatprep.subr.mxu0 %v1926_v15  ;;  %1739 = vmatmul.mubr.f32.vlgmr.msra.gmra.mxu1 %v2073_v40 }
 0x1ed   : > { %1747 = vmatpush3.msra.mxu1 %v691_v52  ;;  %1754 = vmatmul.mubr.f32.vlgmr.msra.gmra.mxu0 %v730_v51 }
 0x1ee   : > { %1762 = vmatpush3.msra.mxu0 %v1216_v57  ;;  %1748 = vmatprep.mubr.msk.f32.mxu1 %vm1927_vm1, %v1926_v15 }
 0x1ef   : > { %1756 = vmatprep.subr.mxu1 %v1926_v15  ;;  %1763 = vmatprep.mubr.msk.f32.mxu0 %vm1927_vm1, %v1926_v15 }
 0x1f0   : > { %1771 = vmatprep.subr.mxu0 %v1926_v15  ;;  %1749 = vmatmul.mubr.msk.f32.vlgmr.msra.gmra.mxu1 %vm119_vm5, %v1934_v60 }
 0x1f1   : > { %1757 = vmatpush3.msra.mxu1 %v1219_v62  ;;  %1764 = vmatmul.mubr.f32.vlgmr.msra.gmra.mxu0 %v727_v34 }
 0x1f2   : > { %1772 = vmatpush3.msra.mxu0 %v1217_v59  ;;  %1758 = vmatprep.mubr.msk.f32.mxu1 %vm1927_vm1, %v1926_v15 }
 0x1f3   : > { %1766 = vmatprep.subr.mxu1 %v1926_v15  ;;  %1773 = vmatprep.mubr.msk.f32.mxu0 %vm1927_vm1, %v1926_v15 }
 0x1f4   : > { %1759 = vmatmul.mubr.msk.f32.vlgmr.msra.gmra.mxu1 %vm119_vm5, %v1934_v60 }
 0x1f5   : > { %1767 = vmatpush3.msra.mxu1 %v1139_v54  ;;  %1768 = vmatprep.mubr.msk.f32.mxu1 %vm1927_vm1, %v1926_v15 }
 0x1f6   : > { %1776 = vmatprep.subr.mxu1 %v1926_v15  ;;  %1774 = vmatmul.mubr.msk.f32.vlgmr.msra.gmra.mxu0 %vm119_vm5, %v1934_v60 }
 0x1f8   : > { %1769 = vmatmul.mubr.f32.vlgmr.msra.gmra.mxu1 %v2073_v40  ;;  %v75_v40 = vrot.slane %v1907_v11, 2 }
 0x1f9   : > { %1777 = vmatpush3.msra.mxu1 %v1139_v54  ;;  %1778 = vmatprep.mubr.msk.f32.mxu1 %vm1927_vm1, %v1926_v15  ;;  %vm1605_vm1 = vcmask (%p26_p0), 57344  }
 0x1fa   : > { %v77_v47 = vsub.f32 %v73_v38, %v75_v40 }
 0x1fc   : > { %1779 = vmatmul.mubr.msk.f32.vlgmr.msra.gmra.mxu1 %vm119_vm5, %v1934_v60  ;;  %v79_v54 = vrot.slane %v77_v47, 1  ;;  %vm1617_vm5 = vcmask (%p26_p0), 58368  }
 0x1fd   :  { %1618 = vst.msk [vmem:[%s2182_s1 + $0x8] sm:$0x3] (%p26_p0), %vm1617_vm5, %v1953_v2 }
 0x1fe   : > { %v81_v61 = vmul.f32 %v1972_v10, %v79_v54 }
 0x2a0   : > { %v732_v8 = vpop.f32.mrf.mxu0 }
 0x2a2   : > { %v1725_v16 = vpop.f32.mrf.mxu0 }
 0x2a4   : > { %v882_v19 = vpop.f32.mrf.mxu0 }
 0x2a6   : > { %v1735_v20 = vpop.f32.mrf.mxu0 }
 0x2a8   : > { %v808_v22 = vpop.f32.mrf.mxu1 }
 0x2a9   : > { %v809_v23 = vadd.f32 %v808_v22, %v732_v8  ;;  %v1030_v24 = vpop.f32.mrf.mxu0  ;;  %v1564_v8 = vrot.slane %v1562_v58, 2 }
 0x2aa   : > { %v1730_v25 = vpop.f32.mrf.mxu1 }
 0x2ab   : > { %v883_v27 = vadd.f32 %v882_v19, %v809_v23  ;;  %v1745_v15 = vpop.f32.mrf.mxu0  ;;  %v1566_v19 = vadd.f32 %v1915_v13, %v1564_v8 }
 0x2ac   : > { %v956_v29 = vpop.f32.mrf.mxu1 }
 0x2ad   : > { %v957_v30 = vadd.f32 %v956_v29, %v883_v27  ;;  %v1180_v31 = vpop.f32.mrf.mxu0 }
 0x2ae   : > { %v1740_v32 = vpop.f32.mrf.mxu1 }
 0x2af   : > { %v1031_v34 = vadd.f32 %v1030_v24, %v957_v30  ;;  %v1755_v37 = vpop.f32.mrf.mxu0 }
 0x2b0   : > { %v1102_v41 = vpop.f32.mrf.mxu1 }
 0x2b1   : > { %v1103_v42 = vadd.f32 %v1102_v41, %v1031_v34  ;;  %v1330_v43 = vpop.f32.mrf.mxu0 }
 0x2b2   : > { %v1750_v44 = vpop.f32.mrf.mxu1 }
 0x2b3   : > { %v2125_v45 = vadd.f32 %v1103_v42, %v69_v33   ;;  %v1765_v46 = vpop.f32.mrf.mxu0 }
 0x2b4   : > { %v1256_v48 = vpop.f32.mrf.mxu1 }
 0x2b5   : > { %v1560_v63 = vmul.f32 0.0008, %v2125_v45  ;;  %v1257_v49 = vadd.f32 %v1256_v48, %v1180_v31  ;;  %v1572_v14 = vadd.f32 %v1903_v6, %v2125_v45  ;;  %1613 = vst.msk [vmem:[%s2182_s1 + $0x4] sm:$0x1] (%p26_p0), %vm1605_vm1, %v2125_v45 }
 0x2b6   : > { %v1760_v50 = vpop.f32.mrf.mxu1  ;;  %v1478_v51 = vpop.f32.mrf.mxu0 }
 0x2b7   : > { %v1561_v52 = vadd.f32 %v1560_v63, %v1559_v39   ;;  %v1331_v53 = vadd.f32 %v1330_v43, %v1257_v49  ;;  %v1573_v17 = vmul.f32 0.02, %v1572_v14 }
 0x2b8   : > { %v1404_v55 = vpop.f32.mrf.mxu1  ;;  %v1775_v56 = vpop.f32.mrf.mxu0 }
 0x2b9   : > { %v1405_v57 = vadd.f32 %v1404_v55, %v1331_v53  ;;  %v1575_v22 = vrot.slane %v1573_v17, 6  ;;  %v2192_v14 = vmov %v1561_v52  ;;  %1606 = vst.msk [vmem:[%s2182_s1] sm:$0x1] (%p26_p0), %vm1605_vm1, %v1561_v52 }
 0x2ba   : > { %v1770_v59 = vpop.f32.mrf.mxu1 }
 0x2bb   : > { %v1479_v60 = vadd.f32 %v1478_v51, %v1405_v57  ;;  %v1577_v6 = vadd.f32 %v1911_v12, %v1575_v22 }
 0x2bc   : > { %v1550_v62 = vpop.f32.mrf.mxu1 }
 0x2bd   : > { %v1551_v0 = vadd.f32 %v1550_v62, %v1479_v60  ;;  %v1584_v28 = vmul.f32 %v1577_v6, %v1577_v6 }
 0x2be   : > { %v1780_v16 = vpop.f32.mrf.mxu1 }
 0x2bf   : > { %v1554_v18 = vadd.f32 %v1551_v0, %v81_v61  }
 0x2c1   : > { %v1567_v20 = vmul.f32 0.0008, %v1554_v18  ;;  %v1578_v21 = vadd.f32 %v1899_v7, %v1554_v18  ;;  %1614 = vst.msk [vmem:[%s2182_s1 + $0x5] sm:$0x1] (%p26_p0), %vm1605_vm1, %v1554_v18 }
 0x2c3   : > { %v1569_v23 = vrot.slane %v1567_v20, 7  ;;  %v1579_v24 = vmul.f32 0.02, %v1578_v21 }
 0x2c5   : > { %v1571_v25 = vadd.f32 %v1569_v23, %v1566_v19   ;;  %v1581_v26 = vrot.slane %v1579_v24, 5 }
 0x2c7   : > { %v1583_v27 = vadd.f32 %v1907_v11, %v1581_v26  ;;  %1608 = vst.msk [vmem:[%s2182_s1] sm:$0x2] (%p26_p0), %vm1607_vm2, %v1571_v25 }
 0x2c9   : > { %v1585_v15 = vmul.f32 %v1583_v27, %v1583_v27 }
 0x2cb   : > { %v1587_v36 = vrot.slane %v1585_v15, 1 }
 0x2cd   : > { %v1589_v29 = vadd.f32 %v1587_v36, %v1584_v28 }
 0x2cf   : > { %1867 = vrsqrt.f32 %v1589_v29  ;;  %vm1590_vm15 = vcmp.gt.f32.partialorder %v1589_v29, 0.0 }
 0x2dc   : > { %v1868_v30 = vpop.eup %1867 }
 0x2dd   : > { %v1592_v13 = vsel %vm1590_vm15, %v1868_v30, 0.0 }
 0x2de   : > { %v1594_v31 = vrot.slane %v1592_v13, 1  ;;  %v2191_v13 = vmov %v1571_v25 }
 0x2e0   : > { %v1596_v7 = vmul.f32 %v1594_v31, %v1961_v5 }
 0x2e2   : > { %v1597_v32 = vmin.f32 %v1596_v7, 1.0  ;;  %v2187_v7 = vmov %v1554_v18 }
 0x2e4   : > { %v1599_v33 = vrot.slane %v1597_v32, 7  ;;  %v1602_v34 = vrot.slane %v1597_v32, 6  ;;  %28 = sbr.rel (!%p26_p0) target bundleno = 16 (0x10), region = 31 }
 0x2e6   : > { %v1601_v35 = vmul.f32 %v1599_v33, %v1577_v6   ;;  %v1604_v37 = vmul.f32 %v1602_v34, %v1583_v27   ;;  %v2188_v6 = vmov %v2125_v45 }
 0x2e8   : > { %v2189_v11 = vmov %v1604_v37  ;;  %v2190_v12 = vmov %v1601_v35  ;;  %1610 = vst.msk [vmem:[%s2182_s1] sm:$0x4] (%p26_p0), %vm1609_vm3, %v1601_v35 }
 0x2e9   :  { %1612 = vst.msk [vmem:[%s2182_s1] sm:$0x8] %vm1611_vm4, %v1604_v37 }

</bundles_post_ra>
